<compile_context>
chip_gen: v6e
topology: v6e:2x2x1
jax: 0.10.0
libtpu: 0.0.40
codegen_flags: <defaults>
</compile_context>

<pallas_src>
import functools

import jax
import jax.numpy as jnp
from jax.experimental import pallas as pl
from jax.experimental.pallas import tpu as pltpu

_NEG_SLOPE = 0.2
_BN_EPS = 1e-5
_LANE = 128     # flattened-spatial (lane) axis padded to this
_SUB = 8        # channel (sublane) axes padded to this


def _round_up(x, m):
    return (x + m - 1) // m * m


def _compiler_params():
    # Key the VMEM budget off the actual part (64 MiB/TC on v7x, 128 MiB on v5e/v6e).
    try:
        cap = int(pltpu.get_tpu_info().vmem_capacity_bytes)
        limit = min(cap // 2, 64 * 1024 * 1024)
    except Exception:
        limit = 32 * 1024 * 1024
    return pltpu.CompilerParams(
        dimension_semantics=("parallel",),     # batch grid -> both v7x TensorCores
        vmem_limit_bytes=limit,
    )


# ------------------------------ Pallas kernel --------------------------------

def _conv_kernel(mode, deltas, *refs):
    """Fused per-image conv in flat (channels, spatial) layout.

    z_ref : (1, Czp, Mp)    bf16  input / phase image (zero-padded to 8 x 128 multiples)
    w_ref : (T, Coutp, Czp) bf16  per-tap weight matrices
    For tap t with flat spatial offset d = deltas[t]:
        out[:, j] += (w[t] @ z)[:, j + d]
    implemented as a lane-axis roll of the matmul result; f32 accumulation.  Valid
    output positions are a strided subset of j (halo layout); the XLA-side extraction
    (and the mask, for BN statistics) handles that.
    """
    if mode == "bias_leaky":
        z_ref, w_ref, b_ref, o_ref = refs
    elif mode == "raw_stats":
        z_ref, w_ref, mask_ref, o_ref, sum_ref, ssq_ref = refs
    else:  # "sigmoid"
        z_ref, w_ref, o_ref = refs

    z = z_ref[0]                                     # (Czp, Mp) bf16
    mp = z.shape[-1]
    acc = None
    for t, d in enumerate(deltas):
        y = jnp.dot(w_ref[t], z, preferred_element_type=jnp.float32)   # (Coutp, Mp) f32
        if d:
            # result[:, j] = y[:, j + d]  (sources never wrap for valid j)
            y = pltpu.roll(y, shift=(-d) % mp, axis=1)
        acc = y if acc is None else acc + y

    if mode == "bias_leaky":
        acc = acc + b_ref[...]                       # (Coutp, 1) broadcast over lanes
        acc = jnp.maximum(acc, _NEG_SLOPE * acc)
        o_ref[0] = acc.astype(o_ref.dtype)
    elif mode == "raw_stats":
        o_ref[0] = acc.astype(o_ref.dtype)           # raw pre-BN activation (bf16)
        masked = acc * mask_ref[...]                 # zero out halo / padded positions
        sum_ref[0] = jnp.sum(masked, axis=1, keepdims=True)
        ssq_ref[0] = jnp.sum(masked * acc, axis=1, keepdims=True)
    else:  # "sigmoid"
        # sigmoid(y) == 0.5*tanh(0.5*y) + 0.5 ; tanh runs on the EUP, result in [0, 1].
        acc = 0.5 * jnp.tanh(0.5 * acc) + 0.5
        o_ref[0] = acc.astype(o_ref.dtype)


def _conv_call(z, w_taps, deltas, *, mode, bias=None, mask=None, out_dtype):
    """One pallas_call per conv layer, gridded over the batch axis."""
    n, czp, mp = z.shape
    t, coutp, _ = w_taps.shape

    in_specs = [
        pl.BlockSpec((1, czp, mp), lambda i: (i, 0, 0)),
        pl.BlockSpec((t, coutp, czp), lambda i: (0, 0, 0)),
    ]
    inputs = [z, w_taps]
    if mode == "bias_leaky":
        in_specs.append(pl.BlockSpec((coutp, 1), lambda i: (0, 0)))
        inputs.append(bias)
    elif mode == "raw_stats":
        in_specs.append(pl.BlockSpec((1, mp), lambda i: (0, 0)))
        inputs.append(mask)

    out_shape = [jax.ShapeDtypeStruct((n, coutp, mp), out_dtype)]
    out_specs = [pl.BlockSpec((1, coutp, mp), lambda i: (i, 0, 0))]
    if mode == "raw_stats":
        out_shape += [jax.ShapeDtypeStruct((n, coutp, 1), jnp.float32)] * 2
        out_specs += [pl.BlockSpec((1, coutp, 1), lambda i: (i, 0, 0))] * 2

    kern = functools.partial(_conv_kernel, mode, tuple(int(d) for d in deltas))
    flops = 2 * n * t * coutp * czp * mp
    bytes_accessed = (n * czp * mp + t * coutp * czp) * 2 \
        + n * coutp * mp * jnp.dtype(out_dtype).itemsize
    return pl.pallas_call(
        kern,
        out_shape=tuple(out_shape),
        grid=(n,),
        in_specs=in_specs,
        out_specs=tuple(out_specs),
        compiler_params=_compiler_params(),
        cost_estimate=pl.CostEstimate(
            flops=flops,
            transcendentals=n * coutp * mp if mode == "sigmoid" else 0,
            bytes_accessed=bytes_accessed,
        ),
    )(*inputs)


# ------------------------------- XLA glue ------------------------------------

def _prep_s2d(x_nchw, pad):
    """NCHW -> flat space-to-depth phase image (N, Czp, Mp) bf16 for a 4x4 stride-2 conv.

    z[n, (p*2+q)*C + c, h2*W2 + w2] = x_padded[n, c, 2*h2 + p, 2*w2 + q]
    """
    n, c, h, w = x_nchw.shape
    hp, wp = h + 2 * pad, w + 2 * pad
    assert hp % 2 == 0 and wp % 2 == 0, "spatial size must be even after padding"
    h2, w2 = hp // 2, wp // 2
    xp = jnp.pad(x_nchw, ((0, 0), (0, 0), (pad, pad), (pad, pad)))
    z = xp.reshape(n, c, h2, 2, w2, 2)
    z = z.transpose(0, 3, 5, 1, 2, 4).reshape(n, 4 * c, h2 * w2)
    czp = _round_up(4 * c, _SUB)
    mp = _round_up(h2 * w2, _LANE)
    z = jnp.pad(z, ((0, 0), (0, czp - 4 * c), (0, mp - h2 * w2)))
    return z.astype(jnp.bfloat16), h2, w2


def _prep_flat(x_nchw):
    """NCHW -> flat (N, Cp, Mp) bf16 for a stride-1 valid conv."""
    n, c, h, w = x_nchw.shape
    cp = _round_up(c, _SUB)
    mp = _round_up(h * w, _LANE)
    z = x_nchw.reshape(n, c, h * w)
    z = jnp.pad(z, ((0, 0), (0, cp - c), (0, mp - h * w)))
    return z.astype(jnp.bfloat16)


def _w_taps_s2d(w_oihw, czp, coutp):
    """(O, I, 4, 4) -> (4, Coutp, Czp) per-tap weights matching the phase-image layout."""
    cout, cin = w_oihw.shape[0], w_oihw.shape[1]
    w6 = w_oihw.reshape(cout, cin, 2, 2, 2, 2)            # (co, c, a, p, b, q)
    wt = w6.transpose(2, 4, 0, 3, 5, 1).reshape(4, cout, 4 * cin)
    wt = jnp.pad(wt, ((0, 0), (0, coutp - cout), (0, czp - 4 * cin)))
    return wt.astype(jnp.bfloat16)


def _w_taps_s1(w_oihw, czp, coutp):
    """(O, I, KH, KW) -> (KH*KW, Coutp, Czp) per-tap weights for a stride-1 conv."""
    cout, cin, kh, kw = w_oihw.shape
    wt = w_oihw.transpose(2, 3, 0, 1).reshape(kh * kw, cout, cin)
    wt = jnp.pad(wt, ((0, 0), (0, coutp - cout), (0, czp - cin)))
    return wt.astype(jnp.bfloat16)


def _extract_nchw(arr, c, oh, ow, rs):
    """(N, Cp, Mp) flat-halo layout -> logical NCHW (N, c, oh, ow)."""
    n = arr.shape[0]
    return arr[:, :c, :oh * rs].reshape(n, c, oh, rs)[:, :, :, :ow]


def _valid_mask(w2, oh, ow, mp):
    j = jnp.arange(mp)
    valid = (j < oh * w2) & ((j % w2) < ow)
    return valid.astype(jnp.float32).reshape(1, mp)


def _leaky(x):
    return jnp.maximum(x, _NEG_SLOPE * x)


# --------------------------- Parameter construction ---------------------------

def init_discriminator_params(key, image_channels, num_init_filters, num_hidden):
    params = {}
    k0, key = jax.random.split(key)
    params["conv0_w"] = 0.05 * jax.random.normal(
        k0, (num_init_filters, image_channels, 4, 4), jnp.float32)
    params["conv0_b"] = jnp.zeros((num_init_filters,), jnp.float32)

    filt = num_init_filters
    params["blocks"] = []
    for _ in range(num_hidden):
        out_filt = filt * 2
        kw_, key = jax.random.split(key)
        params["blocks"].append({
            "w": 0.05 * jax.random.normal(kw_, (out_filt, filt, 4, 4), jnp.float32),
            "gamma": jnp.ones((out_filt,), jnp.float32),
            "beta": jnp.zeros((out_filt,), jnp.float32),
        })
        filt = out_filt

    kf, key = jax.random.split(key)
    params["convf_w"] = 0.05 * jax.random.normal(kf, (1, filt, 4, 4), jnp.float32)
    return params


# --------------------------------- Forward ------------------------------------

def discriminator_forward(params, x_nchw):
    n = x_nchw.shape[0]
    x = x_nchw.astype(jnp.float32)

    # ---- conv0: Conv(4,2,1) + bias + LeakyReLU --------------------------------
    w0 = params["conv0_w"]
    c_out = w0.shape[0]
    cop = _round_up(c_out, _SUB)
    z, h2, w2 = _prep_s2d(x, pad=1)
    czp = z.shape[1]
    wt = _w_taps_s2d(w0, czp, cop)
    bias = jnp.pad(params["conv0_b"].astype(jnp.float32),
                   (0, cop - c_out)).reshape(cop, 1)
    deltas = [a * w2 + b for a in range(2) for b in range(2)]
    (y,) = _conv_call(z, wt, deltas, mode="bias_leaky", bias=bias,
                      out_dtype=jnp.bfloat16)
    oh, ow = h2 - 1, w2 - 1
    act = (y, c_out, oh, ow, w2)          # flat-halo activation record
    pending = None                        # folded BN (scale, shift) applied lazily

    # ---- hidden blocks: Conv(4,2,1,no bias) + BatchNorm(batch stats) + LeakyReLU
    for blk in params["blocks"]:
        arr, c_in, h_in, w_in, rs = act
        xv = _extract_nchw(arr, c_in, h_in, w_in, rs)
        if pending is not None:
            scale, shift = pending
            xv = _leaky(xv.astype(jnp.float32) * scale[None, :, None, None]
                        + shift[None, :, None, None])
        wb = blk["w"]
        c_out = wb.shape[0]
        cop = _round_up(c_out, _SUB)
        z, h2, w2 = _prep_s2d(xv, pad=1)
        czp, mp = z.shape[1], z.shape[2]
        wt = _w_taps_s2d(wb, czp, cop)
        oh, ow = h2 - 1, w2 - 1
        mask = _valid_mask(w2, oh, ow, mp)
        deltas = [a * w2 + b for a in range(2) for b in range(2)]
        y, psum, pssq = _conv_call(z, wt, deltas, mode="raw_stats", mask=mask,
                                   out_dtype=jnp.bfloat16)
        # Fold batch statistics (biased variance, PyTorch training mode) with
        # gamma/beta into per-channel (scale, shift); applied inside the NEXT layer's
        # prep copy so raw y is written once and read once (no BN pass-2 sweep).
        cnt = float(n * oh * ow)
        s = jnp.sum(psum[:, :c_out, 0], axis=0)
        ss = jnp.sum(pssq[:, :c_out, 0], axis=0)
        mean = s / cnt
        var = ss / cnt - mean * mean
        scale = blk["gamma"].astype(jnp.float32) * jax.lax.rsqrt(var + _BN_EPS)
        shift = blk["beta"].astype(jnp.float32) - mean * scale
        act = (y, c_out, oh, ow, w2)
        pending = (scale, shift)

    # ---- final conv: Conv(4,1,0, no bias) + Sigmoid ---------------------------
    arr, c_in, h_in, w_in, rs = act
    xv = _extract_nchw(arr, c_in, h_in, w_in, rs)
    if pending is not None:
        scale, shift = pending
        xv = _leaky(xv.astype(jnp.float32) * scale[None, :, None, None]
                    + shift[None, :, None, None])
    wf = params["convf_w"]
    c_out = wf.shape[0]
    cop = _round_up(c_out, _SUB)
    z = _prep_flat(xv)
    czp = z.shape[1]
    wt = _w_taps_s1(wf, czp, cop)
    kh, kw = wf.shape[2], wf.shape[3]
    oh, ow = h_in - kh + 1, w_in - kw + 1
    deltas = [i * w_in + j for i in range(kh) for j in range(kw)]
    (out,) = _conv_call(z, wt, deltas, mode="sigmoid", out_dtype=jnp.float32)
    # Extract the valid NCHW output: value at out[n, co, oh_i * w_in + ow_i].
    res = out[:, :c_out, :oh * w_in].reshape(n, c_out, oh, w_in)[:, :, :, :ow]
    return res


# --------------------------- Pure-JAX f32 reference ---------------------------

def _reference_forward(params, x):
    dn = ("NCHW", "OIHW", "NCHW")
    y = jax.lax.conv_general_dilated(x, params["conv0_w"], (2, 2), ((1, 1), (1, 1)),
                                     dimension_numbers=dn)
    y = y + params["conv0_b"][None, :, None, None]
    y = jnp.maximum(y, _NEG_SLOPE * y)
    for blk in params["blocks"]:
        y = jax.lax.conv_general_dilated(y, blk["w"], (2, 2), ((1, 1), (1, 1)),
                                         dimension_numbers=dn)
        mean = jnp.mean(y, axis=(0, 2, 3), keepdims=True)
        var = jnp.mean(jnp.square(y - mean), axis=(0, 2, 3), keepdims=True)
        y = (y - mean) * jax.lax.rsqrt(var + _BN_EPS)
        y = y * blk["gamma"][None, :, None, None] + blk["beta"][None, :, None, None]
        y = jnp.maximum(y, _NEG_SLOPE * y)
    y = jax.lax.conv_general_dilated(y, params["convf_w"], (1, 1), ((0, 0), (0, 0)),
                                     dimension_numbers=dn)
    return jax.nn.sigmoid(y)


if __name__ == "__main__":
    # Small deterministic configuration: batch=2, channels=4, spatial=16,
    # num_init_filters=8, num_hidden=1  =>  16 -> 8 -> 4 -> final 4x4 conv -> 1x1.
    key = jax.random.PRNGKey(0)
    k_params, k_x = jax.random.split(key)

    image_channels = 4
    num_init_filters = 8
    num_hidden = 1

    params = init_discriminator_params(k_params, image_channels,
                                       num_init_filters, num_hidden)
    x = jax.random.normal(k_x, (2, image_channels, 16, 16), jnp.float32)

    fwd = jax.jit(discriminator_forward)
    out = jax.block_until_ready(fwd(params, x))

    assert out.shape == (2, 1, 1, 1), out.shape
    assert bool(jnp.all(jnp.isfinite(out)))
    assert bool(jnp.all((out >= 0.0) & (out <= 1.0)))

    # Cross-check against the pure-JAX f32 reference (bf16 MXU operands -> loose tol).
    ref = jax.block_until_ready(jax.jit(_reference_forward)(params, x))
    err = float(jnp.max(jnp.abs(out - ref.astype(out.dtype))))
    assert err < 5e-2, f"max |kernel - reference| = {err}"

    print("KERNEL_OK")
</pallas_src>

<mosaic_0001>
module attributes {stable_mosaic.version = 11 : i64} {
  func.func @_conv_kernel(%arg0: i32, %arg1: memref<1x16x128xbf16, #tpu.memory_space<vmem>>, %arg2: memref<4x8x16xbf16, #tpu.memory_space<vmem>>, %arg3: memref<8x1xf32, #tpu.memory_space<vmem>>, %arg4: memref<1x8x128xbf16, #tpu.memory_space<vmem>>) attributes {dimension_semantics = [#tpu.dimension_semantics<parallel>], iteration_bounds = array<i64: 2>, scalar_prefetch = 0 : i64, scratch_operands = 0 : i64, tpu.core_type = #tpu.core_type<tc>, window_params = [{transform_indices = @transform_0, window_bounds = array<i64: 1, 16, 128>}, {pipeline_mode = #tpu.pipeline_mode<synchronous>, transform_indices = @transform_1, window_bounds = array<i64: 4, 8, 16>}, {pipeline_mode = #tpu.pipeline_mode<synchronous>, transform_indices = @transform_2, window_bounds = array<i64: 8, 1>}, {transform_indices = @transform_3, window_bounds = array<i64: 1, 8, 128>}]} {
    %c0 = arith.constant 0 : index
    %c0_0 = arith.constant 0 : index
    %c0_1 = arith.constant 0 : index
    %0 = vector.load %arg1[%c0, %c0_0, %c0_1] : memref<1x16x128xbf16, #tpu.memory_space<vmem>>, vector<1x16x128xbf16>
    %1 = vector.shape_cast %0 : vector<1x16x128xbf16> to vector<16x128xbf16>
    %c0_2 = arith.constant 0 : index
    %c0_3 = arith.constant 0 : index
    %c0_4 = arith.constant 0 : index
    %2 = vector.load %arg2[%c0_2, %c0_3, %c0_4] : memref<4x8x16xbf16, #tpu.memory_space<vmem>>, vector<1x8x16xbf16>
    %3 = vector.shape_cast %2 : vector<1x8x16xbf16> to vector<8x16xbf16>
    %cst = arith.constant dense<0.000000e+00> : vector<8x128xf32>
    %4 = tpu.matmul %3, %1, %cst {dimension_numbers = #tpu.dot_dimension_numbers<[1], [0], [0], [1], [0, 0, 1, 1], [], []>} : vector<8x16xbf16>, vector<16x128xbf16>, vector<8x128xf32> -> vector<8x128xf32>
    %c1 = arith.constant 1 : index
    %c0_5 = arith.constant 0 : index
    %c0_6 = arith.constant 0 : index
    %5 = vector.load %arg2[%c1, %c0_5, %c0_6] : memref<4x8x16xbf16, #tpu.memory_space<vmem>>, vector<1x8x16xbf16>
    %6 = vector.shape_cast %5 : vector<1x8x16xbf16> to vector<8x16xbf16>
    %cst_7 = arith.constant dense<0.000000e+00> : vector<8x128xf32>
    %7 = tpu.matmul %6, %1, %cst_7 {dimension_numbers = #tpu.dot_dimension_numbers<[1], [0], [0], [1], [0, 0, 1, 1], [], []>} : vector<8x16xbf16>, vector<16x128xbf16>, vector<8x128xf32> -> vector<8x128xf32>
    %c127_i32 = arith.constant 127 : i32
    %8 = tpu.dynamic_rotate %7 by %c127_i32 dim 1 : vector<8x128xf32>, i32 -> vector<8x128xf32>
    %9 = arith.addf %4, %8 : vector<8x128xf32>
    %c2 = arith.constant 2 : index
    %c0_8 = arith.constant 0 : index
    %c0_9 = arith.constant 0 : index
    %10 = vector.load %arg2[%c2, %c0_8, %c0_9] : memref<4x8x16xbf16, #tpu.memory_space<vmem>>, vector<1x8x16xbf16>
    %11 = vector.shape_cast %10 : vector<1x8x16xbf16> to vector<8x16xbf16>
    %cst_10 = arith.constant dense<0.000000e+00> : vector<8x128xf32>
    %12 = tpu.matmul %11, %1, %cst_10 {dimension_numbers = #tpu.dot_dimension_numbers<[1], [0], [0], [1], [0, 0, 1, 1], [], []>} : vector<8x16xbf16>, vector<16x128xbf16>, vector<8x128xf32> -> vector<8x128xf32>
    %c119_i32 = arith.constant 119 : i32
    %13 = tpu.dynamic_rotate %12 by %c119_i32 dim 1 : vector<8x128xf32>, i32 -> vector<8x128xf32>
    %14 = arith.addf %9, %13 : vector<8x128xf32>
    %c3 = arith.constant 3 : index
    %c0_11 = arith.constant 0 : index
    %c0_12 = arith.constant 0 : index
    %15 = vector.load %arg2[%c3, %c0_11, %c0_12] : memref<4x8x16xbf16, #tpu.memory_space<vmem>>, vector<1x8x16xbf16>
    %16 = vector.shape_cast %15 : vector<1x8x16xbf16> to vector<8x16xbf16>
    %cst_13 = arith.constant dense<0.000000e+00> : vector<8x128xf32>
    %17 = tpu.matmul %16, %1, %cst_13 {dimension_numbers = #tpu.dot_dimension_numbers<[1], [0], [0], [1], [0, 0, 1, 1], [], []>} : vector<8x16xbf16>, vector<16x128xbf16>, vector<8x128xf32> -> vector<8x128xf32>
    %c118_i32 = arith.constant 118 : i32
    %18 = tpu.dynamic_rotate %17 by %c118_i32 dim 1 : vector<8x128xf32>, i32 -> vector<8x128xf32>
    %19 = arith.addf %14, %18 : vector<8x128xf32>
    %c0_14 = arith.constant 0 : index
    %c0_15 = arith.constant 0 : index
    %20 = vector.load %arg3[%c0_14, %c0_15] : memref<8x1xf32, #tpu.memory_space<vmem>>, vector<8x1xf32>
    %21 = vector.broadcast %20 : vector<8x1xf32> to vector<8x128xf32>
    %22 = arith.addf %19, %21 : vector<8x128xf32>
    %cst_16 = arith.constant 2.000000e-01 : f32
    %23 = vector.broadcast %cst_16 : f32 to vector<8x128xf32>
    %24 = arith.mulf %23, %22 : vector<8x128xf32>
    %25 = arith.maximumf %22, %24 : vector<8x128xf32>
    %26 = arith.truncf %25 : vector<8x128xf32> to vector<8x128xbf16>
    %c0_17 = arith.constant 0 : index
    %c0_18 = arith.constant 0 : index
    %c0_19 = arith.constant 0 : index
    %27 = vector.load %arg4[%c0_17, %c0_18, %c0_19] : memref<1x8x128xbf16, #tpu.memory_space<vmem>>, vector<1x8x128xbf16>
    %28 = vector.shape_cast %27 : vector<1x8x128xbf16> to vector<8x128xbf16>
    %29 = vector.shape_cast %26 : vector<8x128xbf16> to vector<1x8x128xbf16>
    tpu.vector_store %arg4[%c0_17, %c0_18, %c0_19], %29 {strides = array<i32>} : memref<1x8x128xbf16, #tpu.memory_space<vmem>>, vector<1x8x128xbf16>,
    return
  }
  func.func @transform_0(%arg0: i32) -> (i32, i32, i32) {
    %c0_i32 = arith.constant 0 : i32
    %c0_i32_0 = arith.constant 0 : i32
    %c0_i32_1 = arith.constant 0 : i32
    return %arg0, %c0_i32, %c0_i32_0 : i32, i32, i32
  }
  func.func @transform_1(%arg0: i32) -> (i32, i32, i32) {
    %c0_i32 = arith.constant 0 : i32
    %c0_i32_0 = arith.constant 0 : i32
    %c0_i32_1 = arith.constant 0 : i32
    %c0_i32_2 = arith.constant 0 : i32
    return %c0_i32, %c0_i32_0, %c0_i32_1 : i32, i32, i32
  }
  func.func @transform_2(%arg0: i32) -> (i32, i32) {
    %c0_i32 = arith.constant 0 : i32
    %c0_i32_0 = arith.constant 0 : i32
    %c0_i32_1 = arith.constant 0 : i32
    return %c0_i32, %c0_i32_0 : i32, i32
  }
  func.func @transform_3(%arg0: i32) -> (i32, i32, i32) {
    %c0_i32 = arith.constant 0 : i32
    %c0_i32_0 = arith.constant 0 : i32
    %c0_i32_1 = arith.constant 0 : i32
    return %arg0, %c0_i32, %c0_i32_0 : i32, i32, i32
  }
}

module attributes {stable_mosaic.version = 11 : i64} {
  func.func @_conv_kernel(%arg0: i32, %arg1: memref<1x32x128xbf16, #tpu.memory_space<vmem>>, %arg2: memref<4x16x32xbf16, #tpu.memory_space<vmem>>, %arg3: memref<1x128xf32, #tpu.memory_space<vmem>>, %arg4: memref<1x16x128xbf16, #tpu.memory_space<vmem>>, %arg5: memref<1x16x1xf32, #tpu.memory_space<vmem>>, %arg6: memref<1x16x1xf32, #tpu.memory_space<vmem>>) attributes {dimension_semantics = [#tpu.dimension_semantics<parallel>], iteration_bounds = array<i64: 2>, scalar_prefetch = 0 : i64, scratch_operands = 0 : i64, tpu.core_type = #tpu.core_type<tc>, window_params = [{transform_indices = @transform_0, window_bounds = array<i64: 1, 32, 128>}, {pipeline_mode = #tpu.pipeline_mode<synchronous>, transform_indices = @transform_1, window_bounds = array<i64: 4, 16, 32>}, {pipeline_mode = #tpu.pipeline_mode<synchronous>, transform_indices = @transform_2, window_bounds = array<i64: 1, 128>}, {transform_indices = @transform_3, window_bounds = array<i64: 1, 16, 128>}, {transform_indices = @transform_4, window_bounds = array<i64: 1, 16, 1>}, {transform_indices = @transform_5, window_bounds = array<i64: 1, 16, 1>}]} {
    %c0 = arith.constant 0 : index
    %c0_0 = arith.constant 0 : index
    %c0_1 = arith.constant 0 : index
    %0 = vector.load %arg1[%c0, %c0_0, %c0_1] : memref<1x32x128xbf16, #tpu.memory_space<vmem>>, vector<1x32x128xbf16>
    %1 = vector.shape_cast %0 : vector<1x32x128xbf16> to vector<32x128xbf16>
    %c0_2 = arith.constant 0 : index
    %c0_3 = arith.constant 0 : index
    %c0_4 = arith.constant 0 : index
    %2 = vector.load %arg2[%c0_2, %c0_3, %c0_4] : memref<4x16x32xbf16, #tpu.memory_space<vmem>>, vector<1x16x32xbf16>
    %3 = vector.shape_cast %2 : vector<1x16x32xbf16> to vector<16x32xbf16>
    %cst = arith.constant dense<0.000000e+00> : vector<16x128xf32>
    %4 = tpu.matmul %3, %1, %cst {dimension_numbers = #tpu.dot_dimension_numbers<[1], [0], [0], [1], [0, 0, 1, 1], [], []>} : vector<16x32xbf16>, vector<32x128xbf16>, vector<16x128xf32> -> vector<16x128xf32>
    %c1 = arith.constant 1 : index
    %c0_5 = arith.constant 0 : index
    %c0_6 = arith.constant 0 : index
    %5 = vector.load %arg2[%c1, %c0_5, %c0_6] : memref<4x16x32xbf16, #tpu.memory_space<vmem>>, vector<1x16x32xbf16>
    %6 = vector.shape_cast %5 : vector<1x16x32xbf16> to vector<16x32xbf16>
    %cst_7 = arith.constant dense<0.000000e+00> : vector<16x128xf32>
    %7 = tpu.matmul %6, %1, %cst_7 {dimension_numbers = #tpu.dot_dimension_numbers<[1], [0], [0], [1], [0, 0, 1, 1], [], []>} : vector<16x32xbf16>, vector<32x128xbf16>, vector<16x128xf32> -> vector<16x128xf32>
    %c127_i32 = arith.constant 127 : i32
    %8 = tpu.dynamic_rotate %7 by %c127_i32 dim 1 : vector<16x128xf32>, i32 -> vector<16x128xf32>
    %9 = arith.addf %4, %8 : vector<16x128xf32>
    %c2 = arith.constant 2 : index
    %c0_8 = arith.constant 0 : index
    %c0_9 = arith.constant 0 : index
    %10 = vector.load %arg2[%c2, %c0_8, %c0_9] : memref<4x16x32xbf16, #tpu.memory_space<vmem>>, vector<1x16x32xbf16>
    %11 = vector.shape_cast %10 : vector<1x16x32xbf16> to vector<16x32xbf16>
    %cst_10 = arith.constant dense<0.000000e+00> : vector<16x128xf32>
    %12 = tpu.matmul %11, %1, %cst_10 {dimension_numbers = #tpu.dot_dimension_numbers<[1], [0], [0], [1], [0, 0, 1, 1], [], []>} : vector<16x32xbf16>, vector<32x128xbf16>, vector<16x128xf32> -> vector<16x128xf32>
    %c123_i32 = arith.constant 123 : i32
    %13 = tpu.dynamic_rotate %12 by %c123_i32 dim 1 : vector<16x128xf32>, i32 -> vector<16x128xf32>
    %14 = arith.addf %9, %13 : vector<16x128xf32>
    %c3 = arith.constant 3 : index
    %c0_11 = arith.constant 0 : index
    %c0_12 = arith.constant 0 : index
    %15 = vector.load %arg2[%c3, %c0_11, %c0_12] : memref<4x16x32xbf16, #tpu.memory_space<vmem>>, vector<1x16x32xbf16>
    %16 = vector.shape_cast %15 : vector<1x16x32xbf16> to vector<16x32xbf16>
    %cst_13 = arith.constant dense<0.000000e+00> : vector<16x128xf32>
    %17 = tpu.matmul %16, %1, %cst_13 {dimension_numbers = #tpu.dot_dimension_numbers<[1], [0], [0], [1], [0, 0, 1, 1], [], []>} : vector<16x32xbf16>, vector<32x128xbf16>, vector<16x128xf32> -> vector<16x128xf32>
    %c122_i32 = arith.constant 122 : i32
    %18 = tpu.dynamic_rotate %17 by %c122_i32 dim 1 : vector<16x128xf32>, i32 -> vector<16x128xf32>
    %19 = arith.addf %14, %18 : vector<16x128xf32>
    %20 = arith.truncf %19 : vector<16x128xf32> to vector<16x128xbf16>
    %c0_14 = arith.constant 0 : index
    %c0_15 = arith.constant 0 : index
    %c0_16 = arith.constant 0 : index
    %21 = vector.load %arg4[%c0_14, %c0_15, %c0_16] : memref<1x16x128xbf16, #tpu.memory_space<vmem>>, vector<1x16x128xbf16>
    %22 = vector.shape_cast %21 : vector<1x16x128xbf16> to vector<16x128xbf16>
    %23 = vector.shape_cast %20 : vector<16x128xbf16> to vector<1x16x128xbf16>
    tpu.vector_store %arg4[%c0_14, %c0_15, %c0_16], %23 {strides = array<i32>} : memref<1x16x128xbf16, #tpu.memory_space<vmem>>, vector<1x16x128xbf16>,
    %c0_17 = arith.constant 0 : index
    %c0_18 = arith.constant 0 : index
    %24 = vector.load %arg3[%c0_17, %c0_18] : memref<1x128xf32, #tpu.memory_space<vmem>>, vector<1x128xf32>
    %25 = vector.broadcast %24 : vector<1x128xf32> to vector<16x128xf32>
    %26 = arith.mulf %19, %25 : vector<16x128xf32>
    %cst_19 = arith.constant dense<0.000000e+00> : vector<16xf32>
    %27 = vector.multi_reduction <add>, %26, %cst_19 [1] : vector<16x128xf32> to vector<16xf32>
    %28 = vector.shape_cast %27 : vector<16xf32> to vector<16x1xf32>
    %c0_20 = arith.constant 0 : index
    %c0_21 = arith.constant 0 : index
    %c0_22 = arith.constant 0 : index
    %29 = vector.load %arg5[%c0_20, %c0_21, %c0_22] : memref<1x16x1xf32, #tpu.memory_space<vmem>>, vector<1x16x1xf32>
    %30 = vector.shape_cast %29 : vector<1x16x1xf32> to vector<16x1xf32>
    %31 = vector.shape_cast %28 : vector<16x1xf32> to vector<1x16x1xf32>
    tpu.vector_store %arg5[%c0_20, %c0_21, %c0_22], %31 {strides = array<i32>} : memref<1x16x1xf32, #tpu.memory_space<vmem>>, vector<1x16x1xf32>,
    %32 = arith.mulf %26, %19 : vector<16x128xf32>
    %cst_23 = arith.constant dense<0.000000e+00> : vector<16xf32>
    %33 = vector.multi_reduction <add>, %32, %cst_23 [1] : vector<16x128xf32> to vector<16xf32>
    %34 = vector.shape_cast %33 : vector<16xf32> to vector<16x1xf32>
    %c0_24 = arith.constant 0 : index
    %c0_25 = arith.constant 0 : index
    %c0_26 = arith.constant 0 : index
    %35 = vector.load %arg6[%c0_24, %c0_25, %c0_26] : memref<1x16x1xf32, #tpu.memory_space<vmem>>, vector<1x16x1xf32>
    %36 = vector.shape_cast %35 : vector<1x16x1xf32> to vector<16x1xf32>
    %37 = vector.shape_cast %34 : vector<16x1xf32> to vector<1x16x1xf32>
    tpu.vector_store %arg6[%c0_24, %c0_25, %c0_26], %37 {strides = array<i32>} : memref<1x16x1xf32, #tpu.memory_space<vmem>>, vector<1x16x1xf32>,
    return
  }
  func.func @transform_0(%arg0: i32) -> (i32, i32, i32) {
    %c0_i32 = arith.constant 0 : i32
    %c0_i32_0 = arith.constant 0 : i32
    %c0_i32_1 = arith.constant 0 : i32
    return %arg0, %c0_i32, %c0_i32_0 : i32, i32, i32
  }
  func.func @transform_1(%arg0: i32) -> (i32, i32, i32) {
    %c0_i32 = arith.constant 0 : i32
    %c0_i32_0 = arith.constant 0 : i32
    %c0_i32_1 = arith.constant 0 : i32
    %c0_i32_2 = arith.constant 0 : i32
    return %c0_i32, %c0_i32_0, %c0_i32_1 : i32, i32, i32
  }
  func.func @transform_2(%arg0: i32) -> (i32, i32) {
    %c0_i32 = arith.constant 0 : i32
    %c0_i32_0 = arith.constant 0 : i32
    %c0_i32_1 = arith.constant 0 : i32
    return %c0_i32, %c0_i32_0 : i32, i32
  }
  func.func @transform_3(%arg0: i32) -> (i32, i32, i32) {
    %c0_i32 = arith.constant 0 : i32
    %c0_i32_0 = arith.constant 0 : i32
    %c0_i32_1 = arith.constant 0 : i32
    return %arg0, %c0_i32, %c0_i32_0 : i32, i32, i32
  }
  func.func @transform_4(%arg0: i32) -> (i32, i32, i32) {
    %c0_i32 = arith.constant 0 : i32
    %c0_i32_0 = arith.constant 0 : i32
    %c0_i32_1 = arith.constant 0 : i32
    return %arg0, %c0_i32, %c0_i32_0 : i32, i32, i32
  }
  func.func @transform_5(%arg0: i32) -> (i32, i32, i32) {
    %c0_i32 = arith.constant 0 : i32
    %c0_i32_0 = arith.constant 0 : i32
    %c0_i32_1 = arith.constant 0 : i32
    return %arg0, %c0_i32, %c0_i32_0 : i32, i32, i32
  }
}

module attributes {stable_mosaic.version = 11 : i64} {
  func.func @_conv_kernel(%arg0: i32, %arg1: memref<1x16x128xbf16, #tpu.memory_space<vmem>>, %arg2: memref<16x8x16xbf16, #tpu.memory_space<vmem>>, %arg3: memref<1x8x128xf32, #tpu.memory_space<vmem>>) attributes {dimension_semantics = [#tpu.dimension_semantics<parallel>], iteration_bounds = array<i64: 2>, scalar_prefetch = 0 : i64, scratch_operands = 0 : i64, tpu.core_type = #tpu.core_type<tc>, window_params = [{transform_indices = @transform_0, window_bounds = array<i64: 1, 16, 128>}, {pipeline_mode = #tpu.pipeline_mode<synchronous>, transform_indices = @transform_1, window_bounds = array<i64: 16, 8, 16>}, {transform_indices = @transform_2, window_bounds = array<i64: 1, 8, 128>}]} {
    %c0 = arith.constant 0 : index
    %c0_0 = arith.constant 0 : index
    %c0_1 = arith.constant 0 : index
    %0 = vector.load %arg1[%c0, %c0_0, %c0_1] : memref<1x16x128xbf16, #tpu.memory_space<vmem>>, vector<1x16x128xbf16>
    %1 = vector.shape_cast %0 : vector<1x16x128xbf16> to vector<16x128xbf16>
    %c0_2 = arith.constant 0 : index
    %c0_3 = arith.constant 0 : index
    %c0_4 = arith.constant 0 : index
    %2 = vector.load %arg2[%c0_2, %c0_3, %c0_4] : memref<16x8x16xbf16, #tpu.memory_space<vmem>>, vector<1x8x16xbf16>
    %3 = vector.shape_cast %2 : vector<1x8x16xbf16> to vector<8x16xbf16>
    %cst = arith.constant dense<0.000000e+00> : vector<8x128xf32>
    %4 = tpu.matmul %3, %1, %cst {dimension_numbers = #tpu.dot_dimension_numbers<[1], [0], [0], [1], [0, 0, 1, 1], [], []>} : vector<8x16xbf16>, vector<16x128xbf16>, vector<8x128xf32> -> vector<8x128xf32>
    %c1 = arith.constant 1 : index
    %c0_5 = arith.constant 0 : index
    %c0_6 = arith.constant 0 : index
    %5 = vector.load %arg2[%c1, %c0_5, %c0_6] : memref<16x8x16xbf16, #tpu.memory_space<vmem>>, vector<1x8x16xbf16>
    %6 = vector.shape_cast %5 : vector<1x8x16xbf16> to vector<8x16xbf16>
    %cst_7 = arith.constant dense<0.000000e+00> : vector<8x128xf32>
    %7 = tpu.matmul %6, %1, %cst_7 {dimension_numbers = #tpu.dot_dimension_numbers<[1], [0], [0], [1], [0, 0, 1, 1], [], []>} : vector<8x16xbf16>, vector<16x128xbf16>, vector<8x128xf32> -> vector<8x128xf32>
    %c127_i32 = arith.constant 127 : i32
    %8 = tpu.dynamic_rotate %7 by %c127_i32 dim 1 : vector<8x128xf32>, i32 -> vector<8x128xf32>
    %9 = arith.addf %4, %8 : vector<8x128xf32>
    %c2 = arith.constant 2 : index
    %c0_8 = arith.constant 0 : index
    %c0_9 = arith.constant 0 : index
    %10 = vector.load %arg2[%c2, %c0_8, %c0_9] : memref<16x8x16xbf16, #tpu.memory_space<vmem>>, vector<1x8x16xbf16>
    %11 = vector.shape_cast %10 : vector<1x8x16xbf16> to vector<8x16xbf16>
    %cst_10 = arith.constant dense<0.000000e+00> : vector<8x128xf32>
    %12 = tpu.matmul %11, %1, %cst_10 {dimension_numbers = #tpu.dot_dimension_numbers<[1], [0], [0], [1], [0, 0, 1, 1], [], []>} : vector<8x16xbf16>, vector<16x128xbf16>, vector<8x128xf32> -> vector<8x128xf32>
    %c126_i32 = arith.constant 126 : i32
    %13 = tpu.dynamic_rotate %12 by %c126_i32 dim 1 : vector<8x128xf32>, i32 -> vector<8x128xf32>
    %14 = arith.addf %9, %13 : vector<8x128xf32>
    %c3 = arith.constant 3 : index
    %c0_11 = arith.constant 0 : index
    %c0_12 = arith.constant 0 : index
    %15 = vector.load %arg2[%c3, %c0_11, %c0_12] : memref<16x8x16xbf16, #tpu.memory_space<vmem>>, vector<1x8x16xbf16>
    %16 = vector.shape_cast %15 : vector<1x8x16xbf16> to vector<8x16xbf16>
    %cst_13 = arith.constant dense<0.000000e+00> : vector<8x128xf32>
    %17 = tpu.matmul %16, %1, %cst_13 {dimension_numbers = #tpu.dot_dimension_numbers<[1], [0], [0], [1], [0, 0, 1, 1], [], []>} : vector<8x16xbf16>, vector<16x128xbf16>, vector<8x128xf32> -> vector<8x128xf32>
    %c125_i32 = arith.constant 125 : i32
    %18 = tpu.dynamic_rotate %17 by %c125_i32 dim 1 : vector<8x128xf32>, i32 -> vector<8x128xf32>
    %19 = arith.addf %14, %18 : vector<8x128xf32>
    %c4 = arith.constant 4 : index
    %c0_14 = arith.constant 0 : index
    %c0_15 = arith.constant 0 : index
    %20 = vector.load %arg2[%c4, %c0_14, %c0_15] : memref<16x8x16xbf16, #tpu.memory_space<vmem>>, vector<1x8x16xbf16>
    %21 = vector.shape_cast %20 : vector<1x8x16xbf16> to vector<8x16xbf16>
    %cst_16 = arith.constant dense<0.000000e+00> : vector<8x128xf32>
    %22 = tpu.matmul %21, %1, %cst_16 {dimension_numbers = #tpu.dot_dimension_numbers<[1], [0], [0], [1], [0, 0, 1, 1], [], []>} : vector<8x16xbf16>, vector<16x128xbf16>, vector<8x128xf32> -> vector<8x128xf32>
    %c124_i32 = arith.constant 124 : i32
    %23 = tpu.dynamic_rotate %22 by %c124_i32 dim 1 : vector<8x128xf32>, i32 -> vector<8x128xf32>
    %24 = arith.addf %19, %23 : vector<8x128xf32>
    %c5 = arith.constant 5 : index
    %c0_17 = arith.constant 0 : index
    %c0_18 = arith.constant 0 : index
    %25 = vector.load %arg2[%c5, %c0_17, %c0_18] : memref<16x8x16xbf16, #tpu.memory_space<vmem>>, vector<1x8x16xbf16>
    %26 = vector.shape_cast %25 : vector<1x8x16xbf16> to vector<8x16xbf16>
    %cst_19 = arith.constant dense<0.000000e+00> : vector<8x128xf32>
    %27 = tpu.matmul %26, %1, %cst_19 {dimension_numbers = #tpu.dot_dimension_numbers<[1], [0], [0], [1], [0, 0, 1, 1], [], []>} : vector<8x16xbf16>, vector<16x128xbf16>, vector<8x128xf32> -> vector<8x128xf32>
    %c123_i32 = arith.constant 123 : i32
    %28 = tpu.dynamic_rotate %27 by %c123_i32 dim 1 : vector<8x128xf32>, i32 -> vector<8x128xf32>
    %29 = arith.addf %24, %28 : vector<8x128xf32>
    %c6 = arith.constant 6 : index
    %c0_20 = arith.constant 0 : index
    %c0_21 = arith.constant 0 : index
    %30 = vector.load %arg2[%c6, %c0_20, %c0_21] : memref<16x8x16xbf16, #tpu.memory_space<vmem>>, vector<1x8x16xbf16>
    %31 = vector.shape_cast %30 : vector<1x8x16xbf16> to vector<8x16xbf16>
    %cst_22 = arith.constant dense<0.000000e+00> : vector<8x128xf32>
    %32 = tpu.matmul %31, %1, %cst_22 {dimension_numbers = #tpu.dot_dimension_numbers<[1], [0], [0], [1], [0, 0, 1, 1], [], []>} : vector<8x16xbf16>, vector<16x128xbf16>, vector<8x128xf32> -> vector<8x128xf32>
    %c122_i32 = arith.constant 122 : i32
    %33 = tpu.dynamic_rotate %32 by %c122_i32 dim 1 : vector<8x128xf32>, i32 -> vector<8x128xf32>
    %34 = arith.addf %29, %33 : vector<8x128xf32>
    %c7 = arith.constant 7 : index
    %c0_23 = arith.constant 0 : index
    %c0_24 = arith.constant 0 : index
    %35 = vector.load %arg2[%c7, %c0_23, %c0_24] : memref<16x8x16xbf16, #tpu.memory_space<vmem>>, vector<1x8x16xbf16>
    %36 = vector.shape_cast %35 : vector<1x8x16xbf16> to vector<8x16xbf16>
    %cst_25 = arith.constant dense<0.000000e+00> : vector<8x128xf32>
    %37 = tpu.matmul %36, %1, %cst_25 {dimension_numbers = #tpu.dot_dimension_numbers<[1], [0], [0], [1], [0, 0, 1, 1], [], []>} : vector<8x16xbf16>, vector<16x128xbf16>, vector<8x128xf32> -> vector<8x128xf32>
    %c121_i32 = arith.constant 121 : i32
    %38 = tpu.dynamic_rotate %37 by %c121_i32 dim 1 : vector<8x128xf32>, i32 -> vector<8x128xf32>
    %39 = arith.addf %34, %38 : vector<8x128xf32>
    %c8 = arith.constant 8 : index
    %c0_26 = arith.constant 0 : index
    %c0_27 = arith.constant 0 : index
    %40 = vector.load %arg2[%c8, %c0_26, %c0_27] : memref<16x8x16xbf16, #tpu.memory_space<vmem>>, vector<1x8x16xbf16>
    %41 = vector.shape_cast %40 : vector<1x8x16xbf16> to vector<8x16xbf16>
    %cst_28 = arith.constant dense<0.000000e+00> : vector<8x128xf32>
    %42 = tpu.matmul %41, %1, %cst_28 {dimension_numbers = #tpu.dot_dimension_numbers<[1], [0], [0], [1], [0, 0, 1, 1], [], []>} : vector<8x16xbf16>, vector<16x128xbf16>, vector<8x128xf32> -> vector<8x128xf32>
    %c120_i32 = arith.constant 120 : i32
    %43 = tpu.dynamic_rotate %42 by %c120_i32 dim 1 : vector<8x128xf32>, i32 -> vector<8x128xf32>
    %44 = arith.addf %39, %43 : vector<8x128xf32>
    %c9 = arith.constant 9 : index
    %c0_29 = arith.constant 0 : index
    %c0_30 = arith.constant 0 : index
    %45 = vector.load %arg2[%c9, %c0_29, %c0_30] : memref<16x8x16xbf16, #tpu.memory_space<vmem>>, vector<1x8x16xbf16>
    %46 = vector.shape_cast %45 : vector<1x8x16xbf16> to vector<8x16xbf16>
    %cst_31 = arith.constant dense<0.000000e+00> : vector<8x128xf32>
    %47 = tpu.matmul %46, %1, %cst_31 {dimension_numbers = #tpu.dot_dimension_numbers<[1], [0], [0], [1], [0, 0, 1, 1], [], []>} : vector<8x16xbf16>, vector<16x128xbf16>, vector<8x128xf32> -> vector<8x128xf32>
    %c119_i32 = arith.constant 119 : i32
    %48 = tpu.dynamic_rotate %47 by %c119_i32 dim 1 : vector<8x128xf32>, i32 -> vector<8x128xf32>
    %49 = arith.addf %44, %48 : vector<8x128xf32>
    %c10 = arith.constant 10 : index
    %c0_32 = arith.constant 0 : index
    %c0_33 = arith.constant 0 : index
    %50 = vector.load %arg2[%c10, %c0_32, %c0_33] : memref<16x8x16xbf16, #tpu.memory_space<vmem>>, vector<1x8x16xbf16>
    %51 = vector.shape_cast %50 : vector<1x8x16xbf16> to vector<8x16xbf16>
    %cst_34 = arith.constant dense<0.000000e+00> : vector<8x128xf32>
    %52 = tpu.matmul %51, %1, %cst_34 {dimension_numbers = #tpu.dot_dimension_numbers<[1], [0], [0], [1], [0, 0, 1, 1], [], []>} : vector<8x16xbf16>, vector<16x128xbf16>, vector<8x128xf32> -> vector<8x128xf32>
    %c118_i32 = arith.constant 118 : i32
    %53 = tpu.dynamic_rotate %52 by %c118_i32 dim 1 : vector<8x128xf32>, i32 -> vector<8x128xf32>
    %54 = arith.addf %49, %53 : vector<8x128xf32>
    %c11 = arith.constant 11 : index
    %c0_35 = arith.constant 0 : index
    %c0_36 = arith.constant 0 : index
    %55 = vector.load %arg2[%c11, %c0_35, %c0_36] : memref<16x8x16xbf16, #tpu.memory_space<vmem>>, vector<1x8x16xbf16>
    %56 = vector.shape_cast %55 : vector<1x8x16xbf16> to vector<8x16xbf16>
    %cst_37 = arith.constant dense<0.000000e+00> : vector<8x128xf32>
    %57 = tpu.matmul %56, %1, %cst_37 {dimension_numbers = #tpu.dot_dimension_numbers<[1], [0], [0], [1], [0, 0, 1, 1], [], []>} : vector<8x16xbf16>, vector<16x128xbf16>, vector<8x128xf32> -> vector<8x128xf32>
    %c117_i32 = arith.constant 117 : i32
    %58 = tpu.dynamic_rotate %57 by %c117_i32 dim 1 : vector<8x128xf32>, i32 -> vector<8x128xf32>
    %59 = arith.addf %54, %58 : vector<8x128xf32>
    %c12 = arith.constant 12 : index
    %c0_38 = arith.constant 0 : index
    %c0_39 = arith.constant 0 : index
    %60 = vector.load %arg2[%c12, %c0_38, %c0_39] : memref<16x8x16xbf16, #tpu.memory_space<vmem>>, vector<1x8x16xbf16>
    %61 = vector.shape_cast %60 : vector<1x8x16xbf16> to vector<8x16xbf16>
    %cst_40 = arith.constant dense<0.000000e+00> : vector<8x128xf32>
    %62 = tpu.matmul %61, %1, %cst_40 {dimension_numbers = #tpu.dot_dimension_numbers<[1], [0], [0], [1], [0, 0, 1, 1], [], []>} : vector<8x16xbf16>, vector<16x128xbf16>, vector<8x128xf32> -> vector<8x128xf32>
    %c116_i32 = arith.constant 116 : i32
    %63 = tpu.dynamic_rotate %62 by %c116_i32 dim 1 : vector<8x128xf32>, i32 -> vector<8x128xf32>
    %64 = arith.addf %59, %63 : vector<8x128xf32>
    %c13 = arith.constant 13 : index
    %c0_41 = arith.constant 0 : index
    %c0_42 = arith.constant 0 : index
    %65 = vector.load %arg2[%c13, %c0_41, %c0_42] : memref<16x8x16xbf16, #tpu.memory_space<vmem>>, vector<1x8x16xbf16>
    %66 = vector.shape_cast %65 : vector<1x8x16xbf16> to vector<8x16xbf16>
    %cst_43 = arith.constant dense<0.000000e+00> : vector<8x128xf32>
    %67 = tpu.matmul %66, %1, %cst_43 {dimension_numbers = #tpu.dot_dimension_numbers<[1], [0], [0], [1], [0, 0, 1, 1], [], []>} : vector<8x16xbf16>, vector<16x128xbf16>, vector<8x128xf32> -> vector<8x128xf32>
    %c115_i32 = arith.constant 115 : i32
    %68 = tpu.dynamic_rotate %67 by %c115_i32 dim 1 : vector<8x128xf32>, i32 -> vector<8x128xf32>
    %69 = arith.addf %64, %68 : vector<8x128xf32>
    %c14 = arith.constant 14 : index
    %c0_44 = arith.constant 0 : index
    %c0_45 = arith.constant 0 : index
    %70 = vector.load %arg2[%c14, %c0_44, %c0_45] : memref<16x8x16xbf16, #tpu.memory_space<vmem>>, vector<1x8x16xbf16>
    %71 = vector.shape_cast %70 : vector<1x8x16xbf16> to vector<8x16xbf16>
    %cst_46 = arith.constant dense<0.000000e+00> : vector<8x128xf32>
    %72 = tpu.matmul %71, %1, %cst_46 {dimension_numbers = #tpu.dot_dimension_numbers<[1], [0], [0], [1], [0, 0, 1, 1], [], []>} : vector<8x16xbf16>, vector<16x128xbf16>, vector<8x128xf32> -> vector<8x128xf32>
    %c114_i32 = arith.constant 114 : i32
    %73 = tpu.dynamic_rotate %72 by %c114_i32 dim 1 : vector<8x128xf32>, i32 -> vector<8x128xf32>
    %74 = arith.addf %69, %73 : vector<8x128xf32>
    %c15 = arith.constant 15 : index
    %c0_47 = arith.constant 0 : index
    %c0_48 = arith.constant 0 : index
    %75 = vector.load %arg2[%c15, %c0_47, %c0_48] : memref<16x8x16xbf16, #tpu.memory_space<vmem>>, vector<1x8x16xbf16>
    %76 = vector.shape_cast %75 : vector<1x8x16xbf16> to vector<8x16xbf16>
    %cst_49 = arith.constant dense<0.000000e+00> : vector<8x128xf32>
    %77 = tpu.matmul %76, %1, %cst_49 {dimension_numbers = #tpu.dot_dimension_numbers<[1], [0], [0], [1], [0, 0, 1, 1], [], []>} : vector<8x16xbf16>, vector<16x128xbf16>, vector<8x128xf32> -> vector<8x128xf32>
    %c113_i32 = arith.constant 113 : i32
    %78 = tpu.dynamic_rotate %77 by %c113_i32 dim 1 : vector<8x128xf32>, i32 -> vector<8x128xf32>
    %79 = arith.addf %74, %78 : vector<8x128xf32>
    %cst_50 = arith.constant 5.000000e-01 : f32
    %80 = vector.broadcast %cst_50 : f32 to vector<8x128xf32>
    %81 = arith.mulf %80, %79 : vector<8x128xf32>
    %82 = math.tanh %81 : vector<8x128xf32>
    %cst_51 = arith.constant 5.000000e-01 : f32
    %83 = vector.broadcast %cst_51 : f32 to vector<8x128xf32>
    %84 = arith.mulf %83, %82 : vector<8x128xf32>
    %cst_52 = arith.constant 5.000000e-01 : f32
    %85 = vector.broadcast %cst_52 : f32 to vector<8x128xf32>
    %86 = arith.addf %84, %85 : vector<8x128xf32>
    %c0_53 = arith.constant 0 : index
    %c0_54 = arith.constant 0 : index
    %c0_55 = arith.constant 0 : index
    %87 = vector.load %arg3[%c0_53, %c0_54, %c0_55] : memref<1x8x128xf32, #tpu.memory_space<vmem>>, vector<1x8x128xf32>
    %88 = vector.shape_cast %87 : vector<1x8x128xf32> to vector<8x128xf32>
    %89 = vector.shape_cast %86 : vector<8x128xf32> to vector<1x8x128xf32>
    tpu.vector_store %arg3[%c0_53, %c0_54, %c0_55], %89 {strides = array<i32>} : memref<1x8x128xf32, #tpu.memory_space<vmem>>, vector<1x8x128xf32>,
    return
  }
  func.func @transform_0(%arg0: i32) -> (i32, i32, i32) {
    %c0_i32 = arith.constant 0 : i32
    %c0_i32_0 = arith.constant 0 : i32
    %c0_i32_1 = arith.constant 0 : i32
    return %arg0, %c0_i32, %c0_i32_0 : i32, i32, i32
  }
  func.func @transform_1(%arg0: i32) -> (i32, i32, i32) {
    %c0_i32 = arith.constant 0 : i32
    %c0_i32_0 = arith.constant 0 : i32
    %c0_i32_1 = arith.constant 0 : i32
    %c0_i32_2 = arith.constant 0 : i32
    return %c0_i32, %c0_i32_0, %c0_i32_1 : i32, i32, i32
  }
  func.func @transform_2(%arg0: i32) -> (i32, i32, i32) {
    %c0_i32 = arith.constant 0 : i32
    %c0_i32_0 = arith.constant 0 : i32
    %c0_i32_1 = arith.constant 0 : i32
    return %arg0, %c0_i32, %c0_i32_0 : i32, i32, i32
  }
}

</mosaic_0001>

<bundles_post_ra>
// kernel: discriminator_forward.3
= control target key start
LH: loop header
LB: loop body
LE: loop exit
PB: predicated region body
PF: predicated region fallthrough
CT: control target
= control target key end

     0   :  { %s531_s12 = smov 0   ;;  %s571_s0 = inlined_call_operand.vmem [shape: bf16[2,16,128], index: 0, kind: input, shape index: {}]   ;;  %s572_s1 = inlined_call_operand.vmem [shape: bf16[4,8,16], index: 1, kind: input, shape index: {}]   ;;  %s573_s2 = inlined_call_operand.vmem [shape: f32[8,1], index: 2, kind: input, shape index: {}]   ;;  %s574_s3 = inlined_call_operand.vmem [shape: bf16[2,8,128], index: 3, kind: output, shape index: {}]  }
   0x1 LB: > { %s430_s13 = sadd.s32 4294967295, %s503_s12   ;;  %p434_p0 = scmp.ge.s32.totalorder %s503_s12, 1  ;;  %s503_s12 = sphi %s531_s12, %s13_s12  }
   0x2   : > { %p137_p1 = scmp.lt.s32.totalorder %s503_s12, 3 }
   0x4   : > { %p138_p2 = pnand %p434_p0, %p137_p1 }
   0x5   : > { %p160_p3 = scmp.lt.s32.totalorder (!%p138_p2), %s430_s13, 1  ;;  %s508_s26 = smov (!%p138_p2), 127  }
   0x6   : > { %141 = sbr.rel (%p138_p2) target bundleno = 349 (0x15d), region = 32  ;;  %s509_s29 = smov (!%p138_p2), 119  }
   0x7   : > { %s510_s30 = smov (!%p138_p2), 118  }
   0xb   : > { %v505_v0 = vmov 0.0   ;;  %s576_s13 = smov (!%p160_p3, %s430_s13), 1  ;;  %vm506_vm0 = vmmov 0   ;;  %v438_v2 = vld [vmem:[%s572_s1 + $0x4] sm:$0xf]  ;;  %vm181_vm1 = vcmask 130048  }
   0xc   : > { %457 = vmatprep.subr.bf16.mxu0 %v505_v0  ;;  %463 = vmatprep.subr.bf16.mxu1 %v505_v0  ;;  %s448_s14 = sshll.u32 %s576_s13, 3  ;;  %v172_v3 = vld [vmem:[%s572_s1] sm:$0xf]  ;;  %v442_v4 = vld [vmem:[%s572_s1 + $0x8] sm:$0xf]  ;;  %v507_v6 = vmov 0  }
   0xd   : > { %459 = vmatprep.mubr.msk.bf16.mxu0 %vm506_vm0, %v505_v0  ;;  %465 = vmatprep.mubr.msk.bf16.mxu1 %vm506_vm0, %v505_v0  ;;  %s164_s17 = scalar_lea.vmem %s571_s0, %s448_s14  ;;  %v444_v5 = vld [vmem:[%s572_s1 + $0xc] sm:$0xf]  ;;  %v366_v11 = vld [vmem:[%s573_s2] sm:$0xff]  ;;  %s437_s4 = sshll.u32 %s576_s13, 2 }
   0xe   : > { %v496_v1 = vld [vmem:[%s164_s17] sm:$0xff]   ;;  %495 = vset.pattern.permute.xlu0 %v507_v6  ;;  %s168_s7 = scalar_lea.vmem %s574_s3, %s437_s4 }
   0xf   : > { %458 = vmatpush3.bf16.msra.mxu0 %v496_v1  ;;  %464 = vmatpush3.bf16.msra.mxu1 %v496_v1 }
  0x10   : > { %469 = vmatprep.subr.bf16.mxu0 %v505_v0  ;;  %475 = vmatprep.subr.bf16.mxu1 %v505_v0 }
  0x12   : > { %460 = vmatmul.mubr.msk.bf16.vlgmr.msra.gmra.mxu0 %vm181_vm1, %v438_v2  ;;  %466 = vmatmul.mubr.msk.bf16.vlgmr.msra.gmra.mxu1 %vm181_vm1, %v172_v3 }
  0x13   : > { %470 = vmatpush3.bf16.msra.mxu0 %v496_v1  ;;  %476 = vmatpush3.bf16.msra.mxu1 %v496_v1 }
  0x14   : > { %471 = vmatprep.mubr.msk.bf16.mxu0 %vm506_vm0, %v505_v0  ;;  %477 = vmatprep.mubr.msk.bf16.mxu1 %vm506_vm0, %v505_v0 }
  0x1a   : > { %472 = vmatmul.mubr.msk.bf16.vlgmr.msra.gmra.mxu0 %vm181_vm1, %v442_v4  ;;  %478 = vmatmul.mubr.msk.bf16.vlgmr.msra.gmra.mxu1 %vm181_vm1, %v444_v5 }
  0xd2   : > { %v219_v7 = vpop.f32.mrf.mxu0  ;;  %v264_v8 = vpop.f32.mrf.mxu1 }
  0xd3   : > { %225 = vrot.lane.b32.xlu0 %v219_v7, %s508_s26 }
  0xd4   : > { %v461_v9 = vpop.f32.mrf.mxu0  ;;  %v467_v10 = vpop.f32.mrf.mxu1 }
  0xd6   : > { %v222_v12 = vpop.f32.mrf.mxu0  ;;  %v267_v13 = vpop.f32.mrf.mxu1 }
  0xd7   : > { %369 = vperm.xlu0 %495, %v366_v11  }
  0xd8   : > { %v468_v14 = vpop.f32.mrf.mxu1  ;;  %v462_v15 = vpop.f32.mrf.mxu0 }
  0xda   : > { %v309_v16 = vpop.f32.mrf.mxu0  ;;  %v357_v17 = vpop.f32.mrf.mxu1 }
  0xdb   : > { %315 = vrot.lane.b32.xlu1 %v309_v16, %s509_s29 }
  0xdc   : > { %v473_v18 = vpop.f32.mrf.mxu0  ;;  %v479_v19 = vpop.f32.mrf.mxu1 }
  0xde   : > { %v312_v20 = vpop.f32.mrf.mxu0  ;;  %v360_v21 = vpop.f32.mrf.mxu1 }
  0xdf   : > { %363 = vrot.lane.b32.xlu1 %v357_v17, %s510_s30 }
  0xe0   : > { %v474_v22 = vpop.f32.mrf.mxu0  ;;  %v480_v23 = vpop.f32.mrf.mxu1 }
 0x145   : > { %v226_v24 = vpop.permute.xlu0 %225 }
 0x146   : > { %v265_v26 = vadd.f32 %v264_v8, %v226_v24 }
 0x14d   : > { %v316_v25 = vpop.permute.xlu1 %315 }
 0x14e   : > { %v317_v27 = vadd.f32 %v316_v25, %v265_v26 }
 0x151   : > { %v364_v28 = vpop.permute.xlu1 %363 }
 0x152   : > { %v365_v29 = vadd.f32 %v364_v28, %v317_v27  ;;  %v370_v30 = vpop.permute.xlu0 %369 }
 0x154   : > { %v372_v31 = vadd.f32 %v370_v30, %v365_v29 }
 0x156   : > { %v373_v32 = vmul.f32 0.2, %v372_v31 }
 0x158   : > { %v374_v33 = vmax.f32 %v372_v31, %v373_v32 }
 0x15a   : > { %v375_v34 = vpack.c.bf16 %v374_v33, %v374_v33 }
 0x15c   : > { %376 = vst [vmem:[%s168_s7] sm:$0xf] %v375_v34 }
 0x15d PF: > { %s13_s12 = sadd.s32 1, %s503_s12  }
 0x15e   : > { %p10_p4 = scmp.ge.s32.totalorder %s13_s12, 4  }
 0x160   :  { %12 = sbr.rel (!%p10_p4) target bundleno = 1 (0x1), region = 65 }

// kernel: discriminator_forward.4
= control target key start
LH: loop header
LB: loop body
LE: loop exit
PB: predicated region body
PF: predicated region fallthrough
CT: control target
= control target key end

     0   :  { %s797_s18 = smov 0   ;;  %s852_s0 = inlined_call_operand.vmem [shape: bf16[2,32,128], index: 0, kind: input, shape index: {}]   ;;  %s853_s1 = inlined_call_operand.vmem [shape: bf16[4,16,32], index: 1, kind: input, shape index: {}]   ;;  %s854_s2 = inlined_call_operand.vmem [shape: f32[1,128], index: 2, kind: input, shape index: {}]   ;;  %s855_s3 = inlined_call_operand.vmem [shape: bf16[2,16,128], index: 3, kind: output, shape index: {0}]   ;;  %s856_s4 = inlined_call_operand.vmem [shape: f32[2,16,1], index: 4, kind: output, shape index: {1}]   ;;  %s857_s5 = inlined_call_operand.vmem [shape: f32[2,16,1], index: 5, kind: output, shape index: {2}]  }
   0x1 LB: > { %s646_s19 = sadd.s32 4294967295, %s760_s18   ;;  %p650_p0 = scmp.ge.s32.totalorder %s760_s18, 1  ;;  %s760_s18 = sphi %s797_s18, %s16_s18  }
   0x2   : > { %p192_p1 = scmp.lt.s32.totalorder %s760_s18, 3 }
   0x4   : > { %p193_p2 = pnand %p650_p0, %p192_p1 }
   0x5   : > { %p230_p3 = scmp.lt.s32.totalorder (!%p193_p2), %s646_s19, 1  ;;  %s764_s7 = smov (!%p193_p2), 127  }
   0x6   : > { %196 = sbr.rel (%p193_p2) target bundleno = 491 (0x1eb), region = 32  ;;  %s765_s8 = smov (!%p193_p2), 123  }
   0x7   : > { %s766_s9 = smov (!%p193_p2), 122  }
   0xb   : > { %v762_v0 = vmov 0.0   ;;  %s859_s19 = smov (!%p230_p3, %s646_s19), 1  ;;  %vm763_vm0 = vmmov 0   ;;  %v750_v3 = vld [vmem:[%s853_s1 + $0x8] sm:$0xff]   ;;  %v751_v4 = vld [vmem:[%s853_s1] sm:$0xff]   ;;  %vm277_vm1 = vcmask 261120  }
   0xc   : > { %703 = vmatprep.subr.bf16.mxu0 %v762_v0  ;;  %711 = vmatprep.subr.bf16.mxu1 %v762_v0  ;;  %s810_s20 = sshll.u32 %s859_s19, 4  ;;  %v752_v5 = vld [vmem:[%s853_s1 + $0x10] sm:$0xff]   ;;  %v753_v6 = vld [vmem:[%s853_s1 + $0x18] sm:$0xff]   ;;  %v677_v29 = vld [vmem:[%s854_s2] ss:$0 sm:$0xff]  ;;  %s681_s12 = sshll.u32 %s859_s19, 3 }
   0xd   : > { %707 = vmatprep.mubr.msk.bf16.mxu0 %vm763_vm0, %v762_v0  ;;  %715 = vmatprep.mubr.msk.bf16.mxu1 %vm763_vm0, %v762_v0  ;;  %s234_s23 = scalar_lea.vmem %s852_s0, %s810_s20  ;;  %s239_s15 = scalar_lea.vmem %s855_s3, %s681_s12  ;;  %vm514_vm2 = vcmask 7168  }
   0xe   : > { %v748_v1 = vld [vmem:[%s234_s23 + $0x8] sm:$0xff]   ;;  %v749_v2 = vld [vmem:[%s234_s23] sm:$0xff]   ;;  %s244_s21 = scalar_lea.vmem %s856_s4, %s810_s20  ;;  %s249_s23 = scalar_lea.vmem %s857_s5, %s810_s20 }
   0xf   : > { %704 = vmatpush3.bf16.msra.mxu0 %v748_v1  ;;  %712 = vmatpush3.bf16.msra.mxu1 %v748_v1 }
  0x10   : > { %705 = vmatprep.subr.bf16.mxu0 %v762_v0  ;;  %713 = vmatprep.subr.bf16.mxu1 %v762_v0 }
  0x13   : > { %706 = vmatpush3.bf16.msra.mxu0 %v749_v2  ;;  %714 = vmatpush3.bf16.msra.mxu1 %v749_v2 }
  0x14   : > { %719 = vmatprep.subr.bf16.mxu0 %v762_v0  ;;  %727 = vmatprep.subr.bf16.mxu1 %v762_v0 }
  0x16   : > { %708 = vmatmul.mubr.msk.bf16.vlgmr.msra.gmra.mxu0 %vm277_vm1, %v750_v3  ;;  %716 = vmatmul.mubr.msk.bf16.vlgmr.msra.gmra.mxu1 %vm277_vm1, %v751_v4 }
  0x17   : > { %720 = vmatpush3.bf16.msra.mxu0 %v748_v1  ;;  %728 = vmatpush3.bf16.msra.mxu1 %v748_v1 }
  0x18   : > { %721 = vmatprep.subr.bf16.mxu0 %v762_v0  ;;  %729 = vmatprep.subr.bf16.mxu1 %v762_v0 }
  0x19   : > { %723 = vmatprep.mubr.msk.bf16.mxu0 %vm763_vm0, %v762_v0  ;;  %731 = vmatprep.mubr.msk.bf16.mxu1 %vm763_vm0, %v762_v0 }
  0x1b   : > { %722 = vmatpush3.bf16.msra.mxu0 %v749_v2  ;;  %730 = vmatpush3.bf16.msra.mxu1 %v749_v2 }
  0x1e   : > { %724 = vmatmul.mubr.msk.bf16.vlgmr.msra.gmra.mxu0 %vm277_vm1, %v752_v5  ;;  %732 = vmatmul.mubr.msk.bf16.vlgmr.msra.gmra.mxu1 %vm277_vm1, %v753_v6 }
  0xd6   : > { %v315_v7 = vpop.f32.mrf.mxu0  ;;  %v368_v8 = vpop.f32.mrf.mxu1 }
  0xd7   : > { %322 = vrot.lane.b32.xlu0 %v315_v7, %s764_s7 }
  0xd8   : > { %v709_v9 = vpop.f32.mrf.mxu0  ;;  %v717_v10 = vpop.f32.mrf.mxu1 }
  0xda   : > { %v318_v11 = vpop.f32.mrf.mxu0  ;;  %v371_v12 = vpop.f32.mrf.mxu1 }
  0xdb   : > { %324 = vrot.lane.b32.xlu0 %v318_v11, %s764_s7 }
  0xdc   : > { %v710_v13 = vpop.f32.mrf.mxu0  ;;  %v718_v14 = vpop.f32.mrf.mxu1 }
  0xde   : > { %v420_v15 = vpop.f32.mrf.mxu0  ;;  %v478_v16 = vpop.f32.mrf.mxu1 }
  0xdf   : > { %427 = vrot.lane.b32.xlu1 %v420_v15, %s765_s8  ;;  %485 = vrot.lane.b32.xlu0 %v478_v16, %s766_s9 }
  0xe0   : > { %v725_v17 = vpop.f32.mrf.mxu0  ;;  %v733_v18 = vpop.f32.mrf.mxu1 }
  0xe2   : > { %v423_v19 = vpop.f32.mrf.mxu0  ;;  %v481_v20 = vpop.f32.mrf.mxu1 }
  0xe3   : > { %429 = vrot.lane.b32.xlu1 %v423_v19, %s765_s8 }
  0xe4   : > { %v726_v21 = vpop.f32.mrf.mxu0  ;;  %v734_v22 = vpop.f32.mrf.mxu1 }
  0xe7   : > { %487 = vrot.lane.b32.xlu1 %v481_v20, %s766_s9 }
 0x149   : > { %v323_v23 = vpop.permute.xlu0 %322 }
 0x14a   : > { %v369_v25 = vadd.f32 %v368_v8, %v323_v23 }
 0x14d   : > { %v325_v24 = vpop.permute.xlu0 %324 }
 0x14e   : > { %v372_v32 = vadd.f32 %v371_v12, %v325_v24 }
 0x151   : > { %v428_v26 = vpop.permute.xlu1 %427  ;;  %v486_v27 = vpop.permute.xlu0 %485 }
 0x152   : > { %v431_v28 = vadd.f32 %v428_v26, %v369_v25 }
 0x154   : > { %v489_v30 = vadd.f32 %v486_v27, %v431_v28 }
 0x155   : > { %v430_v31 = vpop.permute.xlu1 %429 }
 0x156   : > { %v508_v33 = vmul.f32 %v677_v29, %v489_v30  ;;  %v432_v34 = vadd.f32 %v430_v31, %v372_v32 }
 0x158   : > { %510 = vadd.xlane.f32.xlu0 %v508_v33  ;;  %v517_v37 = vmul.f32 %v508_v33, %v489_v30 }
 0x159   : > { %v488_v35 = vpop.permute.xlu1 %487 }
 0x15a   : > { %v490_v36 = vadd.f32 %v488_v35, %v432_v34 }
 0x15c   : > { %v689_v38 = vpack.c.bf16 %v490_v36, %v489_v30  ;;  %519 = vadd.xlane.f32.xlu0 %v517_v37  ;;  %v509_v39 = vmul.f32 %v677_v29, %v490_v36 }
 0x15e   : > { %690 = vst [vmem:[%s239_s15] sm:$0xff] %v689_v38   ;;  %512 = vadd.xlane.f32.xlu1 %v509_v39  ;;  %v518_v40 = vmul.f32 %v509_v39, %v490_v36 }
 0x160   : > { %521 = vadd.xlane.f32.xlu0 %v518_v40 }
 0x1e1   : > { %v511_v41 = vpop.xlane.xlu0 %510 }
 0x1e2   : > { %515 = vst.msk [vmem:[%s244_s21] sm:$0xff] %vm514_vm2, %v511_v41 }
 0x1e5   : > { %v520_v42 = vpop.xlane.xlu0 %519 }
 0x1e6   : > { %523 = vst.msk [vmem:[%s249_s23] sm:$0xff] %vm514_vm2, %v520_v42 }
 0x1e7   : > { %v513_v43 = vpop.xlane.xlu1 %512 }
 0x1e8   : > { %516 = vst.msk [vmem:[%s244_s21 + $0x8] sm:$0xff] %vm514_vm2, %v513_v43 }
 0x1e9   : > { %v522_v44 = vpop.xlane.xlu0 %521 }
 0x1ea   : > { %524 = vst.msk [vmem:[%s249_s23 + $0x8] sm:$0xff] %vm514_vm2, %v522_v44 }
 0x1eb PF: > { %s16_s18 = sadd.s32 1, %s760_s18  }
 0x1ec   : > { %p13_p4 = scmp.ge.s32.totalorder %s16_s18, 4  }
 0x1ee   :  { %15 = sbr.rel (!%p13_p4) target bundleno = 1 (0x1), region = 89 }

// kernel: discriminator_forward.5
= control target key start
LH: loop header
LB: loop body
LE: loop exit
PB: predicated region body
PF: predicated region fallthrough
CT: control target
= control target key end

     0   :  { %s1212_s9 = smov 0   ;;  %s1369_s0 = inlined_call_operand.vmem [shape: bf16[2,16,128], index: 0, kind: input, shape index: {}]   ;;  %s1370_s1 = inlined_call_operand.vmem [shape: bf16[16,8,16], index: 1, kind: input, shape index: {}]   ;;  %s1371_s2 = inlined_call_operand.vmem [shape: f32[2,8,128], index: 2, kind: output, shape index: {}]  }
   0x1 LB: > { %s973_s10 = sadd.s32 4294967295, %s1178_s9   ;;  %p977_p0 = scmp.ge.s32.totalorder %s1178_s9, 1  ;;  %s1178_s9 = sphi %s1212_s9, %s12_s9  }
   0x2   : > { %p112_p1 = scmp.lt.s32.totalorder %s1178_s9, 3 }
   0x4   : > { %p113_p2 = pnand %p977_p0, %p112_p1 }
   0x5   : > { %p133_p3 = scmp.lt.s32.totalorder (!%p113_p2), %s973_s10, 1  ;;  %s1182_s22 = smov (!%p113_p2), 127  }
   0x6   : > { %116 = sbr.rel (%p113_p2) target bundleno = 407 (0x197), region = 28  ;;  %s1183_s23 = smov (!%p113_p2), 126  }
   0x7   : > { %s1184_s24 = smov (!%p113_p2), 125   ;;  %s1185_s25 = smov (!%p113_p2), 124  }
   0x8   : > { %s1186_s26 = smov (!%p113_p2), 123   ;;  %s1187_s27 = smov (!%p113_p2), 122  }
   0x9   : > { %s1188_s28 = smov (!%p113_p2), 121   ;;  %s1189_s29 = smov (!%p113_p2), 120  }
   0xa   : > { %s1190_s30 = smov (!%p113_p2), 119   ;;  %s1191_s3 = smov (!%p113_p2), 118  }
   0xb   : > { %v1180_v0 = vmov 0.0   ;;  %s1373_s10 = smov (!%p133_p3, %s973_s10), 1  ;;  %vm1181_vm0 = vmmov 0   ;;  %v981_v2 = vld [vmem:[%s1370_s1 + $0x4] sm:$0xf]  ;;  %vm154_vm1 = vcmask 130048  }
   0xc   : > { %1048 = vmatprep.subr.bf16.mxu0 %v1180_v0  ;;  %1054 = vmatprep.subr.bf16.mxu1 %v1180_v0  ;;  %s1015_s11 = sshll.u32 %s1373_s10, 3  ;;  %v145_v3 = vld [vmem:[%s1370_s1] sm:$0xf]  ;;  %v985_v4 = vld [vmem:[%s1370_s1 + $0x8] sm:$0xf]  ;;  %s1192_s4 = smov 117  }
   0xd   : > { %1050 = vmatprep.mubr.msk.bf16.mxu0 %vm1181_vm0, %v1180_v0  ;;  %1056 = vmatprep.mubr.msk.bf16.mxu1 %vm1181_vm0, %v1180_v0  ;;  %s137_s14 = scalar_lea.vmem %s1369_s0, %s1015_s11  ;;  %v987_v5 = vld [vmem:[%s1370_s1 + $0xc] sm:$0xf]  ;;  %v989_v6 = vld [vmem:[%s1370_s1 + $0x10] sm:$0xf]  ;;  %v991_v7 = vld [vmem:[%s1370_s1 + $0x14] sm:$0xf] }
   0xe   : > { %v1234_v1 = vld [vmem:[%s137_s14] sm:$0xff]   ;;  %v993_v8 = vld [vmem:[%s1370_s1 + $0x18] sm:$0xf]  ;;  %v995_v9 = vld [vmem:[%s1370_s1 + $0x1c] sm:$0xf]  ;;  %s1193_s5 = smov 116   ;;  %s141_s14 = scalar_lea.vmem %s1371_s2, %s1015_s11 }
   0xf   : > { %1049 = vmatpush3.bf16.msra.mxu0 %v1234_v1  ;;  %1055 = vmatpush3.bf16.msra.mxu1 %v1234_v1  ;;  %v997_v10 = vld [vmem:[%s1370_s1 + $0x20] sm:$0xf]  ;;  %v999_v11 = vld [vmem:[%s1370_s1 + $0x24] sm:$0xf]  ;;  %v1001_v12 = vld [vmem:[%s1370_s1 + $0x28] sm:$0xf] }
  0x10   : > { %1060 = vmatprep.subr.bf16.mxu0 %v1180_v0  ;;  %1066 = vmatprep.subr.bf16.mxu1 %v1180_v0  ;;  %v1003_v13 = vld [vmem:[%s1370_s1 + $0x2c] sm:$0xf]  ;;  %v1005_v14 = vld [vmem:[%s1370_s1 + $0x30] sm:$0xf]  ;;  %v1007_v15 = vld [vmem:[%s1370_s1 + $0x34] sm:$0xf] }
  0x11   : > { %v1009_v16 = vld [vmem:[%s1370_s1 + $0x38] sm:$0xf]  ;;  %v1011_v17 = vld [vmem:[%s1370_s1 + $0x3c] sm:$0xf]  ;;  %s1194_s6 = smov 115   ;;  %s1195_s7 = smov 114  }
  0x12   : > { %1051 = vmatmul.mubr.msk.bf16.vlgmr.msra.gmra.mxu0 %vm154_vm1, %v981_v2  ;;  %1057 = vmatmul.mubr.msk.bf16.vlgmr.msra.gmra.mxu1 %vm154_vm1, %v145_v3  ;;  %s1196_s8 = smov 113  }
  0x13   : > { %1061 = vmatpush3.bf16.msra.mxu0 %v1234_v1  ;;  %1067 = vmatpush3.bf16.msra.mxu1 %v1234_v1 }
  0x14   : > { %1062 = vmatprep.mubr.msk.bf16.mxu0 %vm1181_vm0, %v1180_v0  ;;  %1068 = vmatprep.mubr.msk.bf16.mxu1 %vm1181_vm0, %v1180_v0 }
  0x15   : > { %1072 = vmatprep.subr.bf16.mxu0 %v1180_v0  ;;  %1078 = vmatprep.subr.bf16.mxu1 %v1180_v0 }
  0x1a   : > { %1063 = vmatmul.mubr.msk.bf16.vlgmr.msra.gmra.mxu0 %vm154_vm1, %v985_v4  ;;  %1069 = vmatmul.mubr.msk.bf16.vlgmr.msra.gmra.mxu1 %vm154_vm1, %v987_v5 }
  0x1b   : > { %1073 = vmatpush3.bf16.msra.mxu0 %v1234_v1  ;;  %1079 = vmatpush3.bf16.msra.mxu1 %v1234_v1 }
  0x1c   : > { %1074 = vmatprep.mubr.msk.bf16.mxu0 %vm1181_vm0, %v1180_v0  ;;  %1080 = vmatprep.mubr.msk.bf16.mxu1 %vm1181_vm0, %v1180_v0 }
  0x1d   : > { %1084 = vmatprep.subr.bf16.mxu0 %v1180_v0  ;;  %1090 = vmatprep.subr.bf16.mxu1 %v1180_v0 }
  0x22   : > { %1075 = vmatmul.mubr.msk.bf16.vlgmr.msra.gmra.mxu0 %vm154_vm1, %v989_v6  ;;  %1081 = vmatmul.mubr.msk.bf16.vlgmr.msra.gmra.mxu1 %vm154_vm1, %v991_v7 }
  0x23   : > { %1085 = vmatpush3.bf16.msra.mxu0 %v1234_v1  ;;  %1091 = vmatpush3.bf16.msra.mxu1 %v1234_v1 }
  0x24   : > { %1086 = vmatprep.mubr.msk.bf16.mxu0 %vm1181_vm0, %v1180_v0  ;;  %1092 = vmatprep.mubr.msk.bf16.mxu1 %vm1181_vm0, %v1180_v0 }
  0x25   : > { %1096 = vmatprep.subr.bf16.mxu0 %v1180_v0  ;;  %1102 = vmatprep.subr.bf16.mxu1 %v1180_v0 }
  0x2a   : > { %1087 = vmatmul.mubr.msk.bf16.vlgmr.msra.gmra.mxu0 %vm154_vm1, %v993_v8  ;;  %1093 = vmatmul.mubr.msk.bf16.vlgmr.msra.gmra.mxu1 %vm154_vm1, %v995_v9 }
  0x2b   : > { %1097 = vmatpush3.bf16.msra.mxu0 %v1234_v1  ;;  %1103 = vmatpush3.bf16.msra.mxu1 %v1234_v1 }
  0x2c   : > { %1098 = vmatprep.mubr.msk.bf16.mxu0 %vm1181_vm0, %v1180_v0  ;;  %1104 = vmatprep.mubr.msk.bf16.mxu1 %vm1181_vm0, %v1180_v0 }
  0x2d   : > { %1108 = vmatprep.subr.bf16.mxu0 %v1180_v0  ;;  %1114 = vmatprep.subr.bf16.mxu1 %v1180_v0 }
  0x32   : > { %1099 = vmatmul.mubr.msk.bf16.vlgmr.msra.gmra.mxu0 %vm154_vm1, %v997_v10  ;;  %1105 = vmatmul.mubr.msk.bf16.vlgmr.msra.gmra.mxu1 %vm154_vm1, %v999_v11 }
  0x33   : > { %1109 = vmatpush3.bf16.msra.mxu0 %v1234_v1  ;;  %1115 = vmatpush3.bf16.msra.mxu1 %v1234_v1 }
  0x34   : > { %1110 = vmatprep.mubr.msk.bf16.mxu0 %vm1181_vm0, %v1180_v0  ;;  %1116 = vmatprep.mubr.msk.bf16.mxu1 %vm1181_vm0, %v1180_v0 }
  0x35   : > { %1120 = vmatprep.subr.bf16.mxu0 %v1180_v0  ;;  %1126 = vmatprep.subr.bf16.mxu1 %v1180_v0 }
  0x3a   : > { %1111 = vmatmul.mubr.msk.bf16.vlgmr.msra.gmra.mxu0 %vm154_vm1, %v1001_v12  ;;  %1117 = vmatmul.mubr.msk.bf16.vlgmr.msra.gmra.mxu1 %vm154_vm1, %v1003_v13 }
  0x3b   : > { %1121 = vmatpush3.bf16.msra.mxu0 %v1234_v1  ;;  %1127 = vmatpush3.bf16.msra.mxu1 %v1234_v1 }
  0x3c   : > { %1122 = vmatprep.mubr.msk.bf16.mxu0 %vm1181_vm0, %v1180_v0  ;;  %1128 = vmatprep.mubr.msk.bf16.mxu1 %vm1181_vm0, %v1180_v0 }
  0x3d   : > { %1132 = vmatprep.subr.bf16.mxu0 %v1180_v0  ;;  %1138 = vmatprep.subr.bf16.mxu1 %v1180_v0 }
  0x42   : > { %1123 = vmatmul.mubr.msk.bf16.vlgmr.msra.gmra.mxu0 %vm154_vm1, %v1005_v14  ;;  %1129 = vmatmul.mubr.msk.bf16.vlgmr.msra.gmra.mxu1 %vm154_vm1, %v1007_v15 }
  0x43   : > { %1133 = vmatpush3.bf16.msra.mxu0 %v1234_v1  ;;  %1139 = vmatpush3.bf16.msra.mxu1 %v1234_v1 }
  0x44   : > { %1134 = vmatprep.mubr.msk.bf16.mxu0 %vm1181_vm0, %v1180_v0  ;;  %1140 = vmatprep.mubr.msk.bf16.mxu1 %vm1181_vm0, %v1180_v0 }
  0x4a   : > { %1135 = vmatmul.mubr.msk.bf16.vlgmr.msra.gmra.mxu0 %vm154_vm1, %v1009_v16  ;;  %1141 = vmatmul.mubr.msk.bf16.vlgmr.msra.gmra.mxu1 %vm154_vm1, %v1011_v17 }
  0xd2   : > { %v192_v18 = vpop.f32.mrf.mxu0  ;;  %v1358_v19 = vpop.f32.mrf.mxu1 }
  0xd3   : > { %198 = vrot.lane.b32.xlu0 %v192_v18, %s1182_s22 }
  0xd4   : > { %v1052_v20 = vpop.f32.mrf.mxu0  ;;  %v1058_v21 = vpop.f32.mrf.mxu1 }
  0xd6   : > { %v195_v22 = vpop.f32.mrf.mxu0  ;;  %v240_v23 = vpop.f32.mrf.mxu1 }
  0xd8   : > { %v1053_v24 = vpop.f32.mrf.mxu0  ;;  %v1059_v25 = vpop.f32.mrf.mxu1 }
  0xda   : > { %v282_v26 = vpop.f32.mrf.mxu0  ;;  %v330_v27 = vpop.f32.mrf.mxu1 }
  0xdb   : > { %288 = vrot.lane.b32.xlu0 %v282_v26, %s1183_s23  ;;  %336 = vrot.lane.b32.xlu1 %v330_v27, %s1184_s24 }
  0xdc   : > { %v1064_v28 = vpop.f32.mrf.mxu0  ;;  %v1070_v29 = vpop.f32.mrf.mxu1 }
  0xde   : > { %v285_v30 = vpop.f32.mrf.mxu0  ;;  %v333_v31 = vpop.f32.mrf.mxu1 }
  0xe0   : > { %v1065_v32 = vpop.f32.mrf.mxu0  ;;  %v1071_v33 = vpop.f32.mrf.mxu1 }
  0xe2   : > { %v378_v34 = vpop.f32.mrf.mxu0  ;;  %v426_v35 = vpop.f32.mrf.mxu1 }
  0xe3   : > { %384 = vrot.lane.b32.xlu1 %v378_v34, %s1185_s25  ;;  %432 = vrot.lane.b32.xlu0 %v426_v35, %s1186_s26 }
  0xe4   : > { %v1076_v36 = vpop.f32.mrf.mxu0  ;;  %v1082_v37 = vpop.f32.mrf.mxu1 }
  0xe6   : > { %v381_v38 = vpop.f32.mrf.mxu0  ;;  %v429_v39 = vpop.f32.mrf.mxu1 }
  0xe8   : > { %v1077_v40 = vpop.f32.mrf.mxu0  ;;  %v1083_v41 = vpop.f32.mrf.mxu1 }
  0xea   : > { %v474_v42 = vpop.f32.mrf.mxu0  ;;  %v522_v43 = vpop.f32.mrf.mxu1 }
  0xeb   : > { %480 = vrot.lane.b32.xlu1 %v474_v42, %s1187_s27  ;;  %528 = vrot.lane.b32.xlu0 %v522_v43, %s1188_s28 }
  0xec   : > { %v1088_v44 = vpop.f32.mrf.mxu0  ;;  %v1094_v45 = vpop.f32.mrf.mxu1 }
  0xee   : > { %v477_v46 = vpop.f32.mrf.mxu0  ;;  %v525_v47 = vpop.f32.mrf.mxu1 }
  0xf0   : > { %v1089_v48 = vpop.f32.mrf.mxu0  ;;  %v1095_v49 = vpop.f32.mrf.mxu1 }
  0xf2   : > { %v570_v50 = vpop.f32.mrf.mxu0  ;;  %v618_v51 = vpop.f32.mrf.mxu1 }
  0xf3   : > { %576 = vrot.lane.b32.xlu1 %v570_v50, %s1189_s29  ;;  %624 = vrot.lane.b32.xlu0 %v618_v51, %s1190_s30 }
  0xf4   : > { %v1100_v52 = vpop.f32.mrf.mxu0  ;;  %v1106_v53 = vpop.f32.mrf.mxu1 }
  0xf6   : > { %v573_v54 = vpop.f32.mrf.mxu0  ;;  %v621_v55 = vpop.f32.mrf.mxu1 }
  0xf8   : > { %v1101_v56 = vpop.f32.mrf.mxu0  ;;  %v1107_v57 = vpop.f32.mrf.mxu1 }
  0xfa   : > { %v666_v58 = vpop.f32.mrf.mxu0  ;;  %v714_v59 = vpop.f32.mrf.mxu1 }
  0xfb   : > { %672 = vrot.lane.b32.xlu1 %v666_v58, %s1191_s3  ;;  %720 = vrot.lane.b32.xlu0 %v714_v59, %s1192_s4 }
  0xfc   : > { %v1112_v60 = vpop.f32.mrf.mxu0  ;;  %v1118_v61 = vpop.f32.mrf.mxu1 }
  0xfe   : > { %v669_v62 = vpop.f32.mrf.mxu0  ;;  %v717_v63 = vpop.f32.mrf.mxu1 }
 0x100   : > { %v1113_v0 = vpop.f32.mrf.mxu0  ;;  %v1119_v1 = vpop.f32.mrf.mxu1 }
 0x102   : > { %v762_v2 = vpop.f32.mrf.mxu0  ;;  %v810_v3 = vpop.f32.mrf.mxu1 }
 0x103   : > { %768 = vrot.lane.b32.xlu1 %v762_v2, %s1193_s5  ;;  %816 = vrot.lane.b32.xlu0 %v810_v3, %s1194_s6 }
 0x104   : > { %v1124_v4 = vpop.f32.mrf.mxu0  ;;  %v1130_v5 = vpop.f32.mrf.mxu1 }
 0x106   : > { %v765_v6 = vpop.f32.mrf.mxu0  ;;  %v813_v7 = vpop.f32.mrf.mxu1 }
 0x108   : > { %v1125_v8 = vpop.f32.mrf.mxu0  ;;  %v1131_v9 = vpop.f32.mrf.mxu1 }
 0x10a   : > { %v858_v10 = vpop.f32.mrf.mxu0  ;;  %v906_v11 = vpop.f32.mrf.mxu1 }
 0x10b   : > { %864 = vrot.lane.b32.xlu1 %v858_v10, %s1195_s7  ;;  %912 = vrot.lane.b32.xlu0 %v906_v11, %s1196_s8 }
 0x10c   : > { %v1136_v12 = vpop.f32.mrf.mxu0  ;;  %v1142_v13 = vpop.f32.mrf.mxu1 }
 0x10e   : > { %v861_v14 = vpop.f32.mrf.mxu0  ;;  %v909_v15 = vpop.f32.mrf.mxu1 }
 0x110   : > { %v1137_v16 = vpop.f32.mrf.mxu0  ;;  %v1143_v17 = vpop.f32.mrf.mxu1 }
 0x145   : > { %v199_v18 = vpop.permute.xlu0 %198 }
 0x146   : > { %v238_v21 = vadd.f32 %v1358_v19, %v199_v18 }
 0x14d   : > { %v289_v20 = vpop.permute.xlu0 %288  ;;  %v337_v22 = vpop.permute.xlu1 %336 }
 0x14e   : > { %v290_v23 = vadd.f32 %v289_v20, %v238_v21 }
 0x150   : > { %v338_v25 = vadd.f32 %v337_v22, %v290_v23 }
 0x155   : > { %v385_v24 = vpop.permute.xlu1 %384  ;;  %v433_v27 = vpop.permute.xlu0 %432 }
 0x156   : > { %v386_v26 = vadd.f32 %v385_v24, %v338_v25 }
 0x158   : > { %v434_v29 = vadd.f32 %v433_v27, %v386_v26 }
 0x15d   : > { %v481_v28 = vpop.permute.xlu1 %480  ;;  %v529_v31 = vpop.permute.xlu0 %528 }
 0x15e   : > { %v482_v30 = vadd.f32 %v481_v28, %v434_v29 }
 0x160   : > { %v530_v33 = vadd.f32 %v529_v31, %v482_v30 }
 0x165   : > { %v577_v32 = vpop.permute.xlu1 %576  ;;  %v625_v35 = vpop.permute.xlu0 %624 }
 0x166   : > { %v578_v34 = vadd.f32 %v577_v32, %v530_v33 }
 0x168   : > { %v626_v37 = vadd.f32 %v625_v35, %v578_v34 }
 0x16d   : > { %v673_v36 = vpop.permute.xlu1 %672  ;;  %v721_v39 = vpop.permute.xlu0 %720 }
 0x16e   : > { %v674_v38 = vadd.f32 %v673_v36, %v626_v37 }
 0x170   : > { %v722_v40 = vadd.f32 %v721_v39, %v674_v38 }
 0x175   : > { %v769_v19 = vpop.permute.xlu1 %768  ;;  %v817_v42 = vpop.permute.xlu0 %816 }
 0x176   : > { %v770_v41 = vadd.f32 %v769_v19, %v722_v40 }
 0x178   : > { %v818_v43 = vadd.f32 %v817_v42, %v770_v41 }
 0x17d   : > { %v865_v44 = vpop.permute.xlu1 %864  ;;  %v913_v45 = vpop.permute.xlu0 %912 }
 0x17e   : > { %v866_v46 = vadd.f32 %v865_v44, %v818_v43 }
 0x180   : > { %v914_v47 = vadd.f32 %v913_v45, %v866_v46 }
 0x182   : > { %v915_v48 = vmul.f32 0.5, %v914_v47 }
 0x184   : > { %1170 = vtanh.f32 %v915_v48 }
 0x191   : > { %v1171_v49 = vpop.eup %1170 }
 0x192   : > { %v917_v50 = vmul.f32 0.5, %v1171_v49 }
 0x194   : > { %v918_v51 = vadd.f32 0.5, %v917_v50 }
 0x196   : > { %919 = vst [vmem:[%s141_s14] sm:$0xff] %v918_v51 }
 0x197 PF: > { %s12_s9 = sadd.s32 1, %s1178_s9  }
 0x198   : > { %p9_p4 = scmp.ge.s32.totalorder %s12_s9, 4  }
 0x19a   :  { %11 = sbr.rel (!%p9_p4) target bundleno = 1 (0x1), region = 73 }

</bundles_post_ra>
